<compile_context>
chip_gen: v7x
topology: tpu7x:2x2x1
jax: 0.10.0
libtpu: 0.0.40
codegen_flags: <defaults>
</compile_context>

<pallas_src>
import functools

import jax
import jax.numpy as jnp
from jax.experimental import pallas as pl
from jax.experimental.pallas import tpu as pltpu


def _round_up(n: int, m: int) -> int:
    return ((n + m - 1) // m) * m


def _pad2d(a, rows: int, cols: int):
    r, c = a.shape
    if r == rows and c == cols:
        return a
    return jnp.pad(a, ((0, rows - r), (0, cols - c)))


def _default_hidden_multiple() -> int:
    """256 for the 2x256x256 MXUs (v6e/v7x), 128 for older 128-wide MXUs."""
    try:
        kind = jax.devices()[0].device_kind.lower()
    except Exception:
        return 256
    if any(v in kind for v in ("v2", "v3", "v4", "v5")):
        return 128
    return 256


def prepare_params(w1, b1, w2, b2, *, mxu_dtype=jnp.bfloat16, hid_multiple=None):
    """Pad / cast parameters ONCE (at init or after an optimizer step).

    w1: (in, hidden)   b1: (1, hidden) or (hidden,)
    w2: (hidden, out)  b2: (1, out)    or (out,)

    Returns (w1p, b1p, w2p, b2p) already lane-aligned:
      w1p: (in, hid_p)     mxu_dtype   (input/contraction dim left unpadded)
      b1p: (1, hid_p)      f32
      w2p: (hid_p, out_p)  mxu_dtype
      b2p: (1, out_p)      f32
    Padded lanes are zero, so ReLU / the second matmul stay exact.
    """
    if hid_multiple is None:
        hid_multiple = _default_hidden_multiple()
    in_size, hid = w1.shape
    out_size = w2.shape[1]
    hid_p = _round_up(hid, hid_multiple)
    out_p = _round_up(out_size, 128)

    w1p = _pad2d(w1, in_size, hid_p).astype(mxu_dtype)
    w2p = _pad2d(w2, hid_p, out_p).astype(mxu_dtype)
    # Biases stay f32: bias-add / ReLU epilogue is done in f32 (v5e-safe).
    b1p = _pad2d(jnp.reshape(b1, (1, -1)), 1, hid_p).astype(jnp.float32)
    b2p = _pad2d(jnp.reshape(b2, (1, -1)), 1, out_p).astype(jnp.float32)
    return w1p, b1p, w2p, b2p


def _mlp_kernel(x_ref, w1_ref, b1_ref, w2_ref, b2_ref, o_ref):
    # Cast the activation tile to the MXU dtype in VMEM (no extra HBM traffic).
    x = x_ref[...].astype(w1_ref.dtype)
    # Hidden layer: x @ W1 on the MXU with f32 accumulation.
    h = jnp.dot(x, w1_ref[...], preferred_element_type=jnp.float32)
    # Bias + ReLU epilogue in f32 (VPU; safe on v5e which lacks bf16 VPU/EUP).
    h = jnp.maximum(h + b1_ref[...], 0.0)
    # Output layer: h @ W2 on the MXU with f32 accumulation.
    out = jnp.dot(h.astype(w2_ref.dtype), w2_ref[...],
                  preferred_element_type=jnp.float32)
    o_ref[...] = (out + b2_ref[...]).astype(o_ref.dtype)


@functools.partial(
    jax.jit, static_argnames=("out_size", "tile_b", "keep_padded_lanes"))
def linear_qnet2_forward(x, w1p, b1p, w2p, b2p, *, out_size,
                         tile_b=1024, keep_padded_lanes=False):
    """Forward pass of Linear_QNet2 on pre-padded params (see prepare_params).

    x: (B, in_size) activations, any float dtype (cast to the MXU dtype
       of the weights inside the kernel).
    Returns (B, out_size), or (B, out_p) if keep_padded_lanes=True.
    """
    B, in_size = x.shape
    hid_p = w1p.shape[1]
    out_p = w2p.shape[1]
    out_dtype = x.dtype

    # Packed sublane multiple: 16 rows for 2-byte MXU operands, 8 for f32.
    sub = 16 if jnp.dtype(w1p.dtype).itemsize == 2 else 8

    # Batch tile: multiple of `sub`, chosen so moderate batches give >= 2 grid
    # steps (v7x megacore sharding), capped at tile_b.  The last block may be
    # partial (grid = cdiv) -> no junk rows beyond the ceiling.
    if B <= sub:
        tile = B                                   # full-dim block, grid = (1,)
    else:
        tile = min(tile_b, max(sub, _round_up(-(-B // 2), sub)))
    grid = (pl.cdiv(B, tile),)

    cost = pl.CostEstimate(
        flops=2 * B * (in_size * hid_p + hid_p * out_p),
        transcendentals=0,
        bytes_accessed=(x.size * x.dtype.itemsize
                        + w1p.size * w1p.dtype.itemsize
                        + w2p.size * w2p.dtype.itemsize
                        + b1p.size * 4 + b2p.size * 4
                        + B * out_p * jnp.dtype(out_dtype).itemsize),
    )

    out = pl.pallas_call(
        _mlp_kernel,
        out_shape=jax.ShapeDtypeStruct((B, out_p), out_dtype),
        grid_spec=pltpu.PrefetchScalarGridSpec(
            num_scalar_prefetch=0,
            grid=grid,
            in_specs=[
                # Batch-tiled activations; last dim = true in_size (full dim).
                pl.BlockSpec((tile, in_size), lambda i: (i, 0)),
                # Weights / biases: constant index_map -> VMEM-resident.
                pl.BlockSpec((in_size, hid_p), lambda i: (0, 0)),
                pl.BlockSpec((1, hid_p), lambda i: (0, 0)),
                pl.BlockSpec((hid_p, out_p), lambda i: (0, 0)),
                pl.BlockSpec((1, out_p), lambda i: (0, 0)),
            ],
            out_specs=pl.BlockSpec((tile, out_p), lambda i: (i, 0)),
        ),
        compiler_params=pltpu.CompilerParams(
            dimension_semantics=("parallel",),
        ),
        cost_estimate=cost,
    )(x, w1p, b1p, w2p, b2p)

    if keep_padded_lanes:
        return out
    # Only the padded output lanes need slicing off (batch is already exact).
    return out[:, :out_size]


def init_params(key, input_size, hidden_size, output_size, dtype=jnp.float32):
    """PyTorch nn.Linear default init: U[-1/sqrt(fan_in), 1/sqrt(fan_in)]."""
    k1, k2, k3, k4 = jax.random.split(key, 4)
    bound1 = 1.0 / jnp.sqrt(input_size)
    bound2 = 1.0 / jnp.sqrt(hidden_size)
    # stored already transposed vs. PyTorch: (in, hidden) and (hidden, out)
    w1 = jax.random.uniform(k1, (input_size, hidden_size), dtype, -bound1, bound1)
    b1 = jax.random.uniform(k2, (1, hidden_size), dtype, -bound1, bound1)
    w2 = jax.random.uniform(k3, (hidden_size, output_size), dtype, -bound2, bound2)
    b2 = jax.random.uniform(k4, (1, output_size), dtype, -bound2, bound2)
    return w1, b1, w2, b2


if __name__ == "__main__":
    key = jax.random.PRNGKey(0)
    batch, input_size, hidden_size, output_size = 2, 16, 32, 4

    kx, kp = jax.random.split(key)
    x = jax.random.normal(kx, (batch, input_size), jnp.float32)
    w1, b1, w2, b2 = init_params(kp, input_size, hidden_size, output_size)

    # Pure-JAX reference of the same math.
    ref = jnp.maximum(x @ w1 + b1, 0.0) @ w2 + b2

    # f32 MXU-operand path (exact-ish).
    p_f32 = prepare_params(w1, b1, w2, b2, mxu_dtype=jnp.float32)
    out = linear_qnet2_forward(x, *p_f32, out_size=output_size)
    out = jax.block_until_ready(out)
    assert out.shape == (batch, output_size)
    assert jnp.allclose(out, ref, atol=1e-5, rtol=1e-5)

    # Default bf16 MXU-operand path (f32 accumulation + f32 epilogue).
    # Note: x is also reduced to bf16 at the MXU input inside the kernel.
    p_bf16 = prepare_params(w1, b1, w2, b2)
    out_bf16 = linear_qnet2_forward(x, *p_bf16, out_size=output_size)
    out_bf16 = jax.block_until_ready(out_bf16)
    assert out_bf16.shape == (batch, output_size)
    assert jnp.allclose(out_bf16, ref, atol=5e-2, rtol=5e-2)

    # Larger batch: multi-step grid (>=2 steps) + partial last block.
    big_b = 600
    x_big = jax.random.normal(kx, (big_b, input_size), jnp.float32)
    ref_big = jnp.maximum(x_big @ w1 + b1, 0.0) @ w2 + b2
    out_big = linear_qnet2_forward(x_big, *p_bf16, out_size=output_size)
    out_big = jax.block_until_ready(out_big)
    assert out_big.shape == (big_b, output_size)
    assert jnp.allclose(out_big, ref_big, atol=5e-2, rtol=5e-2)

    print("KERNEL_OK")
</pallas_src>

<mosaic_0001>
module attributes {stable_mosaic.version = 11 : i64} {
  func.func @_mlp_kernel(%arg0: i32, %arg1: memref<2x16xf32, #tpu.memory_space<vmem>>, %arg2: memref<16x256xf32, #tpu.memory_space<vmem>>, %arg3: memref<1x256xf32, #tpu.memory_space<vmem>>, %arg4: memref<256x128xf32, #tpu.memory_space<vmem>>, %arg5: memref<1x128xf32, #tpu.memory_space<vmem>>, %arg6: memref<2x128xf32, #tpu.memory_space<vmem>>) attributes {dimension_semantics = [#tpu.dimension_semantics<parallel>], iteration_bounds = array<i64: 1>, scalar_prefetch = 0 : i64, scratch_operands = 0 : i64, tpu.core_type = #tpu.core_type<tc>, window_params = [{transform_indices = @transform_0, window_bounds = array<i64: 2, 16>}, {pipeline_mode = #tpu.pipeline_mode<synchronous>, transform_indices = @transform_1, window_bounds = array<i64: 16, 256>}, {pipeline_mode = #tpu.pipeline_mode<synchronous>, transform_indices = @transform_2, window_bounds = array<i64: 1, 256>}, {pipeline_mode = #tpu.pipeline_mode<synchronous>, transform_indices = @transform_3, window_bounds = array<i64: 256, 128>}, {pipeline_mode = #tpu.pipeline_mode<synchronous>, transform_indices = @transform_4, window_bounds = array<i64: 1, 128>}, {transform_indices = @transform_5, window_bounds = array<i64: 2, 128>}]} {
    %c0 = arith.constant 0 : index
    %c0_0 = arith.constant 0 : index
    %0 = vector.load %arg1[%c0, %c0_0] : memref<2x16xf32, #tpu.memory_space<vmem>>, vector<2x16xf32>
    %c0_1 = arith.constant 0 : index
    %c0_2 = arith.constant 0 : index
    %1 = vector.load %arg2[%c0_1, %c0_2] : memref<16x256xf32, #tpu.memory_space<vmem>>, vector<16x256xf32>
    %cst = arith.constant dense<0.000000e+00> : vector<2x256xf32>
    %2 = tpu.matmul %0, %1, %cst {dimension_numbers = #tpu.dot_dimension_numbers<[1], [0], [0], [1], [0, 0, 1, 1], [], []>} : vector<2x16xf32>, vector<16x256xf32>, vector<2x256xf32> -> vector<2x256xf32>
    %c0_3 = arith.constant 0 : index
    %c0_4 = arith.constant 0 : index
    %3 = vector.load %arg3[%c0_3, %c0_4] : memref<1x256xf32, #tpu.memory_space<vmem>>, vector<1x256xf32>
    %4 = vector.broadcast %3 : vector<1x256xf32> to vector<2x256xf32>
    %5 = arith.addf %2, %4 : vector<2x256xf32>
    %cst_5 = arith.constant 0.000000e+00 : f32
    %6 = vector.broadcast %cst_5 : f32 to vector<2x256xf32>
    %7 = arith.maximumf %5, %6 : vector<2x256xf32>
    %c0_6 = arith.constant 0 : index
    %c0_7 = arith.constant 0 : index
    %8 = vector.load %arg4[%c0_6, %c0_7] : memref<256x128xf32, #tpu.memory_space<vmem>>, vector<256x128xf32>
    %cst_8 = arith.constant dense<0.000000e+00> : vector<2x128xf32>
    %9 = tpu.matmul %7, %8, %cst_8 {dimension_numbers = #tpu.dot_dimension_numbers<[1], [0], [0], [1], [0, 0, 1, 1], [], []>} : vector<2x256xf32>, vector<256x128xf32>, vector<2x128xf32> -> vector<2x128xf32>
    %c0_9 = arith.constant 0 : index
    %c0_10 = arith.constant 0 : index
    %10 = vector.load %arg5[%c0_9, %c0_10] : memref<1x128xf32, #tpu.memory_space<vmem>>, vector<1x128xf32>
    %11 = vector.broadcast %10 : vector<1x128xf32> to vector<2x128xf32>
    %12 = arith.addf %9, %11 : vector<2x128xf32>
    %c0_11 = arith.constant 0 : index
    %c0_12 = arith.constant 0 : index
    %13 = vector.load %arg6[%c0_11, %c0_12] : memref<2x128xf32, #tpu.memory_space<vmem>>, vector<2x128xf32>
    tpu.vector_store %arg6[%c0_11, %c0_12], %12 {strides = array<i32>} : memref<2x128xf32, #tpu.memory_space<vmem>>, vector<2x128xf32>,
    return
  }
  func.func @transform_0(%arg0: i32) -> (i32, i32) {
    %c0_i32 = arith.constant 0 : i32
    %c0_i32_0 = arith.constant 0 : i32
    return %arg0, %c0_i32 : i32, i32
  }
  func.func @transform_1(%arg0: i32) -> (i32, i32) {
    %c0_i32 = arith.constant 0 : i32
    %c0_i32_0 = arith.constant 0 : i32
    %c0_i32_1 = arith.constant 0 : i32
    return %c0_i32, %c0_i32_0 : i32, i32
  }
  func.func @transform_2(%arg0: i32) -> (i32, i32) {
    %c0_i32 = arith.constant 0 : i32
    %c0_i32_0 = arith.constant 0 : i32
    %c0_i32_1 = arith.constant 0 : i32
    return %c0_i32, %c0_i32_0 : i32, i32
  }
  func.func @transform_3(%arg0: i32) -> (i32, i32) {
    %c0_i32 = arith.constant 0 : i32
    %c0_i32_0 = arith.constant 0 : i32
    %c0_i32_1 = arith.constant 0 : i32
    return %c0_i32, %c0_i32_0 : i32, i32
  }
  func.func @transform_4(%arg0: i32) -> (i32, i32) {
    %c0_i32 = arith.constant 0 : i32
    %c0_i32_0 = arith.constant 0 : i32
    %c0_i32_1 = arith.constant 0 : i32
    return %c0_i32, %c0_i32_0 : i32, i32
  }
  func.func @transform_5(%arg0: i32) -> (i32, i32) {
    %c0_i32 = arith.constant 0 : i32
    %c0_i32_0 = arith.constant 0 : i32
    return %arg0, %c0_i32 : i32, i32
  }
}

</mosaic_0001>

<bundles_post_ra>
// kernel: linear_qnet2_forward.1
= control target key start
LH: loop header
LB: loop body
LE: loop exit
PB: predicated region body
PF: predicated region fallthrough
CT: control target
= control target key end

     0   :  { %10 = vsyncpa [#allocation3], 0  ;;  %s549_s0 = inlined_call_operand.hbm [shape: f32[2,16], index: 0, kind: input, shape index: {}]   ;;  %s550_s1 = inlined_call_operand.hbm [shape: f32[16,256], index: 1, kind: input, shape index: {}]   ;;  %s551_s2 = inlined_call_operand.vmem [shape: f32[1,256], index: 2, kind: input, shape index: {}]   ;;  %s552_s3 = inlined_call_operand.hbm [shape: f32[256,128], index: 3, kind: input, shape index: {}]   ;;  %s553_s4 = inlined_call_operand.vmem [shape: f32[1,128], index: 4, kind: input, shape index: {}]   ;;  %s554_s5 = inlined_call_operand.hbm [shape: f32[2,128], index: 5, kind: output, shape index: {}]  }
   0x1   :  { %11 = vsyncpa [#allocation6], 0 }
   0x2   :  { %12 = vsyncpa [#allocation4], 0  ;;  %s456_s18 = smov [#allocation5]   ;;  %s362_s22 = scalar_lea.hbm %s550_s1, 512 }
   0x3   :  { %s28_s19 = sshll.u32 %s456_s18, 4  ;;  %p363_p0 = scmp.ne.s32.totalorder %s550_s1, %s362_s22  ;;  %s29_s19 = int_to_ptr.vmem [resolvable:$true] %s28_s19 }
   0x4   :  { %p366_p1 = scmp.lt.u32.totalorder %s362_s22, %s550_s1 }
   0x6   :  { %p368_p2 = pnand %p366_p1, %p363_p0 }
   0x8   :  { %371 = shalt.err (!%p368_p2)
}
   0x9   :  { %s372_s27 = scalar_lea.vmem %s29_s19, 512  ;;  %p377_p4 = scmp.lt.s32.totalorder %s29_s19, %s29_s19 }
   0xa   :  { %p373_p3 = scmp.ne.s32.totalorder %s29_s19, %s372_s27  ;;  %p378_p5 = scmp.lt.s32.totalorder %s372_s27, %s372_s27 }
   0xc   :  { %p379_p6 = por %p378_p5, %p377_p4 }
   0xe   :  { %p380_p7 = pnand %p379_p6, %p373_p3 }
  0x10   :  { %383 = shalt.err (!%p380_p7)
}
  0x11   :  { %s457_s28 = smov 256   ;;  %s458_s29 = smov 16  }
  0x12   :  { %34 = dma.hbm_to_vmem [thread:$0]  %s550_s1, 512, %s29_s19, [#allocation6], %s457_s28, %s457_s28, %s458_s29  }
  0x13   :  { %s459_s7 = smov [#allocation2]   ;;  %s460_s9 = smov [#allocation7]  }
  0x14   :  { %s19_s8 = sshll.u32 %s459_s7, 4  ;;  %s42_s10 = sshll.u32 %s460_s9, 4  ;;  %s20_s8 = int_to_ptr.vmem [resolvable:$true] %s19_s8  ;;  %s43_s10 = int_to_ptr.vmem [resolvable:$true] %s42_s10 }
  0x15   :  { %s384_s13 = scalar_lea.hbm %s549_s0, 32 }
  0x16   :  { %p385_p8 = scmp.ne.s32.totalorder %s549_s0, %s384_s13  ;;  %p388_p9 = scmp.lt.u32.totalorder %s384_s13, %s549_s0 }
  0x18   :  { %p390_p10 = pnand %p388_p9, %p385_p8 }
  0x1a   :  { %393 = shalt.err (!%p390_p10)
}
  0x1b   :  { %s394_s1 = scalar_lea.vmem %s20_s8, 32  ;;  %p399_p12 = scmp.lt.s32.totalorder %s20_s8, %s20_s8 }
  0x1c   :  { %p395_p11 = scmp.ne.s32.totalorder %s20_s8, %s394_s1  ;;  %p400_p13 = scmp.lt.s32.totalorder %s394_s1, %s394_s1 }
  0x1e   :  { %p401_p0 = por %p400_p13, %p399_p12 }
  0x20   :  { %p402_p1 = pnand %p401_p0, %p395_p11 }
  0x22   :  { %405 = shalt.err (!%p402_p1)
}
  0x23   :  { %22 = dma.hbm_to_vmem [thread:$0]  %s549_s0, 32, %s20_s8, [#allocation3]  }
  0x24   :  { %s406_s22 = scalar_lea.hbm %s552_s3, 4096 }
  0x25   :  { %p407_p2 = scmp.ne.s32.totalorder %s552_s3, %s406_s22  ;;  %p410_p3 = scmp.lt.u32.totalorder %s406_s22, %s552_s3 }
  0x27   :  { %p412_p4 = pnand %p410_p3, %p407_p2 }
  0x29   :  { %415 = shalt.err (!%p412_p4)
}
  0x2a   :  { %s416_s27 = scalar_lea.vmem %s43_s10, 4096  ;;  %p421_p6 = scmp.lt.s32.totalorder %s43_s10, %s43_s10 }
  0x2b   :  { %p417_p5 = scmp.ne.s32.totalorder %s43_s10, %s416_s27  ;;  %p422_p7 = scmp.lt.s32.totalorder %s416_s27, %s416_s27 }
  0x2d   :  { %p423_p8 = por %p422_p7, %p421_p6 }
  0x2f   :  { %p424_p9 = pnand %p423_p8, %p417_p5 }
  0x31   :  { %427 = shalt.err (!%p424_p9)
}
  0x32   :  { %s461_s0 = smov 128   ;;  %s462_s28 = smov 8  }
  0x33   :  { %48 = dma.hbm_to_vmem [thread:$0]  %s552_s3, 4096, %s43_s10, [#allocation6], %s461_s0, %s461_s0, %s462_s28  }
  0x34   :  { %450 = dma.done.wait [#allocation3], 32  }
  0x35   :  { %451 = vsyncadd [#allocation3], 4294967264 }
  0x36   :  { %452 = dma.done.wait [#allocation6], 4608  }
  0x37   :  { %453 = vsyncadd [#allocation6], 4294962688  ;;  %v463_v0 = vmov 0.0   ;;  %v62_v1 = vld [vmem:[#allocation5 + $0x8] sm:$0xff]  ;;  %v64_v2 = vld [vmem:[#allocation5 + $0x18] sm:$0xff]  ;;  %vm77_vm0 = vcmask 130048   ;;  %v67_v56 = vlaneseq }
  0x38   :  { %145 = vmatprep.mubr.f32.mxu0 %v463_v0  ;;  %v61_v3 = vld [vmem:[#allocation5] sm:$0xff]  ;;  %v317_v4 = vpack.c.bf16 %v64_v2, %v62_v1  ;;  %v63_v5 = vld [vmem:[#allocation5 + $0x10] sm:$0xff]  ;;  %v60_v8 = vld [vmem:[#allocation2] sm:$0x3]  ;;  %s464_s9 = smov [#allocation8]  }
  0x39   :  { %v170_v6 = vld [vmem:[#allocation7 + $0x80] sm:$0xff]  ;;  %v319_v7 = vpack.c.bf16 %v63_v5, %v61_v3  ;;  %v171_v9 = vld [vmem:[#allocation7 + $0x88] sm:$0xff]  ;;  %v172_v14 = vld [vmem:[#allocation7 + $0x90] sm:$0xff]  ;;  %v68_v57 = vshrl.u32 %v67_v56, 7  ;;  %s270_s10 = sshll.u32 %s464_s9, 4  ;;  %s271_s10 = int_to_ptr.vmem [resolvable:$true] %s270_s10 }
  0x3a   :  { %v154_v10 = vld [vmem:[#allocation7] sm:$0xff]  ;;  %v155_v11 = vld [vmem:[#allocation7 + $0x8] sm:$0xff]  ;;  %318 = vmatprep.subr.bf16.mxu0 %v317_v4  ;;  %v321_v12 = vpack.c.bf16 %v171_v9, %v170_v6  ;;  %v173_v15 = vld [vmem:[#allocation7 + $0x98] sm:$0xff]  ;;  %p433_p11 = scmp.lt.s32.totalorder %s271_s10, %s271_s10 }
  0x3b   :  { %v323_v13 = vpack.c.bf16 %v155_v11, %v154_v10  ;;  %v156_v16 = vld [vmem:[#allocation7 + $0x10] sm:$0xff]  ;;  %320 = vmatpush1.bf16.msra.mxu0 %v319_v7  ;;  %v325_v17 = vpack.c.bf16 %v173_v15, %v172_v14  ;;  %v157_v18 = vld [vmem:[#allocation7 + $0x18] sm:$0xff]  ;;  %v174_v19 = vld [vmem:[#allocation7 + $0xa0] sm:$0xff]  ;;  %v69_v58 = vsub.s32 0, %v68_v57  ;;  %v73_v60 = vsub.s32 1, %v68_v57 }
  0x3c   :  { %v175_v20 = vld [vmem:[#allocation7 + $0xa8] sm:$0xff]  ;;  %322 = vmatprep.subr.bf16.mxu1 %v321_v12  ;;  %v327_v21 = vpack.c.bf16 %v157_v18, %v156_v16  ;;  %v158_v23 = vld [vmem:[#allocation7 + $0x20] sm:$0xff]  ;;  %v176_v25 = vld [vmem:[#allocation7 + $0xb0] sm:$0xff] }
  0x3d   :  { %324 = vmatpush3.bf16.msra.mxu1 %v323_v13  ;;  %v329_v22 = vpack.c.bf16 %v175_v20, %v174_v19  ;;  %v159_v24 = vld [vmem:[#allocation7 + $0x28] sm:$0xff]  ;;  %v177_v26 = vld [vmem:[#allocation7 + $0xb8] sm:$0xff]  ;;  %v160_v29 = vld [vmem:[#allocation7 + $0x30] sm:$0xff] }
  0x3e   :  { %280 = vmatmul.mubr.msk.f32.vlgmr.msra.gmra.mrb[0].mxu0 %vm77_vm0, %v60_v8  ;;  %326 = vmatprep.subr.bf16.mxu1 %v325_v17  ;;  %v331_v27 = vpack.c.bf16 %v159_v24, %v158_v23  ;;  %v333_v28 = vpack.c.bf16 %v177_v26, %v176_v25  ;;  %v161_v30 = vld [vmem:[#allocation7 + $0x38] sm:$0xff]  ;;  %v178_v31 = vld [vmem:[#allocation7 + $0xc0] sm:$0xff]  ;;  %v179_v32 = vld [vmem:[#allocation7 + $0xc8] sm:$0xff] }
  0x3f   :  { %v335_v33 = vpack.c.bf16 %v161_v30, %v160_v29  ;;  %v337_v34 = vpack.c.bf16 %v179_v32, %v178_v31  ;;  %v162_v35 = vld [vmem:[#allocation7 + $0x40] sm:$0xff]  ;;  %v163_v36 = vld [vmem:[#allocation7 + $0x48] sm:$0xff]  ;;  %v180_v37 = vld [vmem:[#allocation7 + $0xd0] sm:$0xff] }
  0x40   :  { %v181_v38 = vld [vmem:[#allocation7 + $0xd8] sm:$0xff]  ;;  %v339_v39 = vpack.c.bf16 %v163_v36, %v162_v35  ;;  %v164_v41 = vld [vmem:[#allocation7 + $0x50] sm:$0xff]  ;;  %v182_v43 = vld [vmem:[#allocation7 + $0xe0] sm:$0xff] }
  0x41   :  { %328 = vmatpush3.bf16.msra.mxu1 %v327_v21  ;;  %v341_v40 = vpack.c.bf16 %v181_v38, %v180_v37  ;;  %v165_v42 = vld [vmem:[#allocation7 + $0x58] sm:$0xff]  ;;  %v183_v44 = vld [vmem:[#allocation7 + $0xe8] sm:$0xff]  ;;  %v166_v47 = vld [vmem:[#allocation7 + $0x60] sm:$0xff] }
  0x42   :  { %330 = vmatprep.subr.bf16.mxu1 %v329_v22  ;;  %v343_v45 = vpack.c.bf16 %v165_v42, %v164_v41  ;;  %v345_v46 = vpack.c.bf16 %v183_v44, %v182_v43  ;;  %v167_v48 = vld [vmem:[#allocation7 + $0x68] sm:$0xff]  ;;  %v184_v50 = vld [vmem:[#allocation7 + $0xf0] sm:$0xff]  ;;  %v185_v51 = vld [vmem:[#allocation7 + $0xf8] sm:$0xff] }
  0x43   :  { %v347_v49 = vpack.c.bf16 %v167_v48, %v166_v47  ;;  %v349_v52 = vpack.c.bf16 %v185_v51, %v184_v50  ;;  %v168_v53 = vld [vmem:[#allocation7 + $0x70] sm:$0xff]  ;;  %v169_v54 = vld [vmem:[#allocation7 + $0x78] sm:$0xff] }
  0x44   :  { %v351_v55 = vpack.c.bf16 %v169_v54, %v168_v53  ;;  %v65_v59 = vld [vmem:[%s551_s2] sm:$0x3]  ;;  %s428_s2 = scalar_lea.vmem %s271_s10, 32 }
  0x45   :  { %332 = vmatpush3.bf16.msra.mxu1 %v331_v27  ;;  %v70_v61 = vrot.slane %v65_v59, %v69_v58  ;;  %v74_v62 = vrot.slane %v65_v59, %v73_v60  ;;  %v281_v6 = vld [vmem:[%s553_s4] ss:$0 sm:$0xff]  ;;  %p429_p10 = scmp.ne.s32.totalorder %s271_s10, %s428_s2  ;;  %p434_p12 = scmp.lt.s32.totalorder %s428_s2, %s428_s2 }
  0x46   :  { %334 = vmatprep.subr.bf16.mxu1 %v333_v28 }
  0x47   :  { %p435_p13 = por %p434_p12, %p433_p11 }
  0x49   :  { %336 = vmatpush3.bf16.msra.mxu1 %v335_v33  ;;  %p436_p0 = pnand %p435_p13, %p429_p10 }
  0x4a   :  { %338 = vmatprep.subr.bf16.mxu1 %v337_v34 }
  0x4d   :  { %340 = vmatpush3.bf16.msra.mxu1 %v339_v39 }
  0x4e   :  { %342 = vmatprep.subr.bf16.mxu1 %v341_v40 }
  0x51   :  { %344 = vmatpush3.bf16.msra.mxu1 %v343_v45 }
  0x52   :  { %346 = vmatprep.subr.bf16.mxu1 %v345_v46 }
  0x55   :  { %348 = vmatpush3.bf16.msra.mxu1 %v347_v49 }
  0x56   :  { %350 = vmatprep.subr.bf16.mxu1 %v349_v52 }
  0x59   :  { %352 = vmatpush3.bf16.msra.mxu1 %v351_v55 }
 0x111   :  { %v147_v63 = vpop.f32.mrb[0].mxu0 }
 0x112   :  { %v148_v0 = vadd.f32 %v147_v63, %v70_v61  ;;  %v149_v1 = vpop.f32.mrb[1].mxu0 }
 0x113   :  { %v150_v2 = vadd.f32 %v149_v1, %v74_v62 }
 0x114   :  { %v152_v4 = vmax.f32 %v148_v0, 0.0 }
 0x115   :  { %v153_v3 = vmax.f32 %v150_v2, 0.0 }
 0x117   :  { %257 = vmatprep.mubr.f32.mxu1 %v153_v3 }
 0x118   :  { %258 = vmatmul.mubr.f32.vlgmr.msra.gmra.mrb[0].mxu1 %v152_v4 }
 0x1eb   :  { %v314_v5 = vpop.f32.mrb[0].mxu1 }
 0x1ec   :  { %v315_v7 = vpop.f32.mrb[1].mxu1 }
 0x1ed   :  { %v316_v8 = vadd.f32 %v315_v7, %v314_v5 }
 0x1ef   :  { %v260_v9 = vadd.f32 %v316_v8, %v281_v6 }
 0x1f1   :  { %263 = vst [vmem:[#allocation8] sm:$0x3] %v260_v9 }
 0x1f2   :  { %439 = shalt.err (!%p436_p0)
}
 0x1f3   :  { %s440_s13 = scalar_lea.hbm %s554_s5, 32 }
 0x1f4   :  { %p441_p1 = scmp.ne.s32.totalorder %s554_s5, %s440_s13  ;;  %p444_p2 = scmp.lt.u32.totalorder %s440_s13, %s554_s5 }
 0x1f6   :  { %p446_p3 = pnand %p444_p2, %p441_p1 }
 0x1f8   :  { %449 = shalt.err (!%p446_p3)
}
 0x1f9   :  { %273 = dma.vmem_to_hbm [thread:$0]  %s271_s10, 32, %s554_s5, [#allocation4]  }
 0x1fa   :  { %454 = dma.done.wait [#allocation4], 32  }
 0x1fb   :  { %455 = vsyncadd [#allocation4], 4294967264 }
 0x1fc   :  { %277 = vsyncpa [#allocation3], 1 }
 0x1fd   :  { %278 = vsyncpa [#allocation6], 1 }
 0x1fe   :  { %279 = vsyncpa [#allocation4], 1 }

</bundles_post_ra>
